<compile_context>
chip_gen: v5e
topology: v5e:2x2
jax: 0.10.0
libtpu: 0.0.40
codegen_flags: <defaults>
</compile_context>

<pallas_src>
import functools

import jax
import jax.numpy as jnp
from jax.experimental import pallas as pl
from jax.experimental.pallas import tpu as pltpu

BN_EPS = 1e-5


def _make_divisible(v, divisor, min_value=None):
    if min_value is None:
        min_value = divisor
    new_v = max(min_value, int(v + divisor / 2) // divisor * divisor)
    if new_v < 0.9 * v:
        new_v += divisor
    return new_v


def _round_up(x, m):
    return (x + m - 1) // m * m


def _vmem_limit_bytes():
    # Per-generation scoped-VMEM limit: 3/4 of physical, capped at 96 MiB.
    # (v5e/v6e: 128 MiB physical -> 96 MiB; v7x: 64 MiB physical -> 48 MiB.)
    cap = 64 * 1024 * 1024
    try:
        info = pltpu.get_tpu_info()
        cap = int(getattr(info, "vmem_capacity_bytes", cap))
    except Exception:
        pass
    return min(int(cap * 3 // 4), 96 * 1024 * 1024)


_VMEM_LIMIT = _vmem_limit_bytes()


# ----------------------------------------------------------------------------
# Pallas kernels
# ----------------------------------------------------------------------------

def _matmul_kernel(x_ref, w_ref, b_ref, o_ref, *, relu6):
    """o = clip(x @ w + bias, 0, 6) (clip optional). BN scale pre-folded in w."""
    acc = jnp.dot(x_ref[...], w_ref[...], preferred_element_type=jnp.float32)
    y = acc + b_ref[...]
    if relu6:
        y = jnp.clip(y, 0.0, 6.0)
    o_ref[...] = y.astype(o_ref.dtype)


def _matmul_res_kernel(x_ref, w_ref, b_ref, r_ref, o_ref):
    """Projection 1x1 conv with the residual skip-add fused into the epilogue."""
    acc = jnp.dot(x_ref[...], w_ref[...], preferred_element_type=jnp.float32)
    y = acc + b_ref[...] + r_ref[...].astype(jnp.float32)
    o_ref[...] = y.astype(o_ref.dtype)


def matmul_affine(x, w, bias, *, relu6, residual=None, out_dtype=jnp.bfloat16):
    """x:(M,K) bf16 @ w:(K,N) bf16 (+bias f32, optional ReLU6 / residual).

    K and N are used at natural size (full-dim blocks); only M is tiled,
    padded to a multiple of TM=256 when needed.
    """
    M, K = x.shape
    N = w.shape[1]
    TM = M if M <= 256 else 256
    Mp = _round_up(M, TM)
    if Mp != M:
        x = jnp.pad(x, ((0, Mp - M), (0, 0)))
        if residual is not None:
            residual = jnp.pad(residual, ((0, Mp - M), (0, 0)))

    x_spec = pl.BlockSpec((TM, K), lambda i: (i, 0))
    w_spec = pl.BlockSpec((K, N), lambda i: (0, 0))
    b_spec = pl.BlockSpec((1, N), lambda i: (0, 0))
    o_spec = pl.BlockSpec((TM, N), lambda i: (i, 0))
    cp = pltpu.CompilerParams(dimension_semantics=("parallel",),
                              vmem_limit_bytes=_VMEM_LIMIT)

    if residual is None:
        out = pl.pallas_call(
            functools.partial(_matmul_kernel, relu6=relu6),
            out_shape=jax.ShapeDtypeStruct((Mp, N), out_dtype),
            grid=(Mp // TM,),
            in_specs=[x_spec, w_spec, b_spec],
            out_specs=o_spec,
            compiler_params=cp,
        )(x, w, bias)
    else:
        r_spec = pl.BlockSpec((TM, N), lambda i: (i, 0))
        out = pl.pallas_call(
            _matmul_res_kernel,
            out_shape=jax.ShapeDtypeStruct((Mp, N), out_dtype),
            grid=(Mp // TM,),
            in_specs=[x_spec, w_spec, b_spec, r_spec],
            out_specs=o_spec,
            compiler_params=cp,
        )(x, w, bias, residual)

    if Mp != M:
        out = out[:M]
    return out


def _dwconv3x3_s1_kernel(x_ref, w_ref, b_ref, o_ref):
    """Stride-1 3x3 depthwise conv + (folded BN) bias + ReLU6, one image."""
    _, Hp, Wp, C = x_ref.shape
    Ho, Wo = Hp - 2, Wp - 2
    acc = jnp.zeros((Ho, Wo, C), jnp.float32)
    # TODO(synk): the 9 shifted window slices cross sublane tiles; an XLU
    # roll-based accumulation would reduce copies for very large W*C tiles.
    for kh in range(3):
        for kw in range(3):
            win = x_ref[0, kh:kh + Ho, kw:kw + Wo, :].astype(jnp.float32)
            acc = acc + win * w_ref[kh, kw]
    y = acc + b_ref[...]
    o_ref[0] = jnp.clip(y, 0.0, 6.0).astype(o_ref.dtype)


def _dwconv3x3_s2_kernel(p00_ref, p01_ref, p10_ref, p11_ref,
                         w_ref, b_ref, o_ref):
    """Stride-2 3x3 depthwise conv on 4 space-to-depth phases (unstrided taps).

    Only the strided output is computed/written (no 4x wasted work)."""
    _, Ho, Wo, C = o_ref.shape
    phases = ((p00_ref, p01_ref), (p10_ref, p11_ref))
    acc = jnp.zeros((Ho, Wo, C), jnp.float32)
    for kh in range(3):
        for kw in range(3):
            p_ref = phases[kh % 2][kw % 2]
            oh, ow = kh // 2, kw // 2
            win = p_ref[0, oh:oh + Ho, ow:ow + Wo, :].astype(jnp.float32)
            acc = acc + win * w_ref[kh, kw]
    y = acc + b_ref[...]
    o_ref[0] = jnp.clip(y, 0.0, 6.0).astype(o_ref.dtype)


def dwconv3x3_bn_relu6(x, w, bias, stride):
    """x:(N,H,W,C) bf16, w:(3,3,1,C) f32 (BN scale folded), bias:(1,C) f32."""
    N, H, W, C = x.shape
    cp = pltpu.CompilerParams(dimension_semantics=("parallel",),
                              vmem_limit_bytes=_VMEM_LIMIT)
    w_spec = pl.BlockSpec((3, 3, 1, C), lambda n: (0, 0, 0, 0))
    b_spec = pl.BlockSpec((1, C), lambda n: (0, 0))

    if stride == 1:
        xp = jnp.pad(x, ((0, 0), (1, 1), (1, 1), (0, 0)))
        Hp, Wp = H + 2, W + 2
        # TODO(synk): for large spatial sizes (e.g. 112x112) tile over output
        # rows with halo blocks to cap VMEM and add more parallel grid points.
        return pl.pallas_call(
            _dwconv3x3_s1_kernel,
            out_shape=jax.ShapeDtypeStruct((N, H, W, C), x.dtype),
            grid=(N,),
            in_specs=[pl.BlockSpec((1, Hp, Wp, C), lambda n: (n, 0, 0, 0)),
                      w_spec, b_spec],
            out_specs=pl.BlockSpec((1, H, W, C), lambda n: (n, 0, 0, 0)),
            compiler_params=cp,
        )(xp, w, bias)

    # stride == 2: split the padded image into 4 even/odd row/col phases so
    # every tap is an unstrided window read and only strided outputs exist.
    Ho = (H - 1) // 2 + 1
    Wo = (W - 1) // 2 + 1
    Hh, Wh = Ho + 1, Wo + 1
    xp = jnp.pad(x, ((0, 0), (1, 2 * Hh - 1 - H), (1, 2 * Wh - 1 - W), (0, 0)))
    phases = [jax.lax.slice(xp, (0, i, j, 0), (N, 2 * Hh, 2 * Wh, C),
                            (1, 2, 2, 1))
              for i in (0, 1) for j in (0, 1)]
    p_spec = pl.BlockSpec((1, Hh, Wh, C), lambda n: (n, 0, 0, 0))
    return pl.pallas_call(
        _dwconv3x3_s2_kernel,
        out_shape=jax.ShapeDtypeStruct((N, Ho, Wo, C), x.dtype),
        grid=(N,),
        in_specs=[p_spec, p_spec, p_spec, p_spec, w_spec, b_spec],
        out_specs=pl.BlockSpec((1, Ho, Wo, C), lambda n: (n, 0, 0, 0)),
        compiler_params=cp,
    )(*phases, w, bias)


def _global_mean_kernel(x_ref, o_ref, *, inv):
    o_ref[...] = jnp.sum(x_ref[...].astype(jnp.float32), axis=(1, 2)) * inv


def global_mean(x):
    """Mean over spatial dims: (N,H,W,C) -> (N,C) f32 (matches x.mean([2,3])).

    Tiled over 128-wide channel groups for more parallel grid points."""
    N, H, W, C = x.shape
    TC = 128 if C % 128 == 0 else C
    return pl.pallas_call(
        functools.partial(_global_mean_kernel, inv=1.0 / (H * W)),
        out_shape=jax.ShapeDtypeStruct((N, C), jnp.float32),
        grid=(N, C // TC),
        in_specs=[pl.BlockSpec((1, H, W, TC), lambda n, c: (n, 0, 0, c))],
        out_specs=pl.BlockSpec((1, TC), lambda n, c: (n, c)),
        compiler_params=pltpu.CompilerParams(
            dimension_semantics=("parallel", "parallel"),
            vmem_limit_bytes=_VMEM_LIMIT),
    )(x)


# ----------------------------------------------------------------------------
# Parameter initialization (deterministic, mirrors MobileNetV2.__init__).
# BN (eval-mode) is folded into weights/biases here, once.
# ----------------------------------------------------------------------------

def _bn_fold(C):
    # BatchNorm2d(eval): gamma=1, beta=0, running_mean=0, running_var=1
    gamma = jnp.ones((C,), jnp.float32)
    beta = jnp.zeros((C,), jnp.float32)
    mean = jnp.zeros((C,), jnp.float32)
    var = jnp.ones((C,), jnp.float32)
    scale = gamma / jnp.sqrt(var + BN_EPS)
    bias = beta - mean * scale
    return scale, bias


def _kaiming_normal(key, shape, fan_out):
    return jax.random.normal(key, shape, jnp.float32) * jnp.sqrt(2.0 / fan_out)


def init_mobilenet_v2(key, num_classes=1000, width_mult=1.0, round_nearest=8):
    setting = [[1, 16, 1, 1], [6, 24, 2, 2], [6, 32, 3, 2], [6, 64, 4, 2],
               [6, 96, 3, 1], [6, 160, 3, 2], [6, 320, 1, 1]]
    input_channel = _make_divisible(32 * width_mult, round_nearest)
    last_channel = _make_divisible(1280 * max(1.0, width_mult), round_nearest)

    keys = iter(jax.random.split(key, 256))
    features = []

    def conv1x1_layer(k, cin, cout, relu6):
        w = _kaiming_normal(k, (cin, cout), fan_out=cout)
        scale, bias = _bn_fold(cout)
        return dict(type='conv1x1',
                    w=(w * scale[None, :]).astype(jnp.bfloat16),
                    b=bias.reshape(1, cout), relu6=relu6)

    # stem: ConvBNReLU(3, input_channel, kernel_size=3, stride=2)
    w = _kaiming_normal(next(keys), (3, 3, 3, input_channel),
                        fan_out=input_channel * 9)
    scale, bias = _bn_fold(input_channel)
    features.append(dict(
        type='stem',
        w=(w * scale[None, None, None, :]).reshape(27, input_channel
                                                   ).astype(jnp.bfloat16),
        b=bias.reshape(1, input_channel), stride=2))

    for t, c, n, s in setting:
        output_channel = _make_divisible(c * width_mult, round_nearest)
        for i in range(n):
            stride = s if i == 0 else 1
            hidden = int(round(input_channel * t))
            layers = []
            if t != 1:
                layers.append(conv1x1_layer(next(keys), input_channel, hidden,
                                            relu6=True))
            wd = _kaiming_normal(next(keys), (3, 3, hidden), fan_out=9 * hidden)
            dscale, dbias = _bn_fold(hidden)
            layers.append(dict(type='dw',
                               w=(wd * dscale[None, None, :]
                                  ).reshape(3, 3, 1, hidden),
                               b=dbias.reshape(1, hidden), stride=stride))
            layers.append(conv1x1_layer(next(keys), hidden, output_channel,
                                        relu6=False))
            features.append(dict(
                type='block', layers=layers,
                residual=(stride == 1 and input_channel == output_channel)))
            input_channel = output_channel

    features.append(conv1x1_layer(next(keys), input_channel, last_channel,
                                  relu6=True))

    wc = (jax.random.normal(next(keys), (last_channel, num_classes),
                            jnp.float32) * 0.01).astype(jnp.bfloat16)
    bc = jnp.zeros((1, num_classes), jnp.float32)
    return dict(features=features, classifier=(wc, bc))


# ----------------------------------------------------------------------------
# Forward pass
# ----------------------------------------------------------------------------

def _conv1x1_apply(x, w, bias, relu6, residual=None):
    N, H, W, C = x.shape
    Cout = w.shape[1]
    res2d = residual.reshape(N * H * W, Cout) if residual is not None else None
    y = matmul_affine(x.reshape(N * H * W, C), w, bias, relu6=relu6,
                      residual=res2d)
    return y.reshape(N, H, W, Cout)


def _stem_apply(x, w, bias, stride):
    # 3x3 conv (pad=1, groups=1) via im2col at natural K=27 + fused matmul.
    # TODO(synk): im2col patch extraction stays in XLA; a direct Pallas stem
    # conv would avoid the 9x patch materialization for very large inputs.
    N, H, W, Cin = x.shape
    xp = jnp.pad(x, ((0, 0), (1, 1), (1, 1), (0, 0)))
    Ho = (H + 2 - 3) // stride + 1
    Wo = (W + 2 - 3) // stride + 1
    cols = []
    for kh in range(3):
        for kw in range(3):
            cols.append(jax.lax.slice(
                xp, (0, kh, kw, 0),
                (N, kh + stride * (Ho - 1) + 1, kw + stride * (Wo - 1) + 1, Cin),
                (1, stride, stride, 1)))
    patches = jnp.concatenate(cols, axis=-1)          # (N, Ho, Wo, 27)
    mat = patches.reshape(N * Ho * Wo, 9 * Cin)
    y = matmul_affine(mat, w, bias, relu6=True)
    return y.reshape(N, Ho, Wo, -1)


def mobilenet_v2_forward(params, x_nchw):
    x = jnp.transpose(x_nchw, (0, 2, 3, 1)).astype(jnp.bfloat16)  # NCHW->NHWC
    for layer in params['features']:
        t = layer['type']
        if t == 'stem':
            x = _stem_apply(x, layer['w'], layer['b'], layer['stride'])
        elif t == 'conv1x1':
            x = _conv1x1_apply(x, layer['w'], layer['b'], layer['relu6'])
        else:  # inverted residual block
            y = x
            subs = layer['layers']
            for idx, sub in enumerate(subs):
                is_last = idx == len(subs) - 1
                if sub['type'] == 'conv1x1':
                    res = x if (layer['residual'] and is_last) else None
                    y = _conv1x1_apply(y, sub['w'], sub['b'], sub['relu6'],
                                       residual=res)
                else:
                    y = dwconv3x3_bn_relu6(y, sub['w'], sub['b'], sub['stride'])
            x = y

    pooled = global_mean(x)                           # (N, last_channel) f32

    # TODO(synk): nn.Dropout(0.2) treated as eval-mode identity (no RNG mask).
    wc, bc = params['classifier']
    logits = matmul_affine(pooled.astype(jnp.bfloat16), wc, bc,
                           relu6=False, out_dtype=jnp.float32)
    return logits


if __name__ == "__main__":
    key = jax.random.PRNGKey(0)
    pkey, xkey = jax.random.split(key)

    params = init_mobilenet_v2(pkey, num_classes=10, width_mult=1.0)

    # Small input consistent with the module: batch=2, 3 channels, 32x32.
    x = jax.random.normal(xkey, (2, 3, 32, 32), jnp.float32)

    logits = mobilenet_v2_forward(params, x)
    logits = jax.block_until_ready(logits)

    assert logits.shape == (2, 10)
    assert bool(jnp.all(jnp.isfinite(logits)))
    print("KERNEL_OK")
</pallas_src>

<mosaic_0001>
module attributes {stable_mosaic.version = 11 : i64} {
  func.func @_matmul_kernel(%arg0: i32, %arg1: memref<256x27xbf16, #tpu.memory_space<vmem>>, %arg2: memref<27x32xbf16, #tpu.memory_space<vmem>>, %arg3: memref<1x32xf32, #tpu.memory_space<vmem>>, %arg4: memref<256x32xbf16, #tpu.memory_space<vmem>>) attributes {dimension_semantics = [#tpu.dimension_semantics<parallel>], iteration_bounds = array<i64: 2>, scalar_prefetch = 0 : i64, scratch_operands = 0 : i64, tpu.core_type = #tpu.core_type<tc>, window_params = [{transform_indices = @transform_0, window_bounds = array<i64: 256, 27>}, {pipeline_mode = #tpu.pipeline_mode<synchronous>, transform_indices = @transform_1, window_bounds = array<i64: 27, 32>}, {pipeline_mode = #tpu.pipeline_mode<synchronous>, transform_indices = @transform_2, window_bounds = array<i64: 1, 32>}, {transform_indices = @transform_3, window_bounds = array<i64: 256, 32>}]} {
    %c0 = arith.constant 0 : index
    %c0_0 = arith.constant 0 : index
    %0 = vector.load %arg1[%c0, %c0_0] : memref<256x27xbf16, #tpu.memory_space<vmem>>, vector<256x27xbf16>
    %c0_1 = arith.constant 0 : index
    %c0_2 = arith.constant 0 : index
    %1 = vector.load %arg2[%c0_1, %c0_2] : memref<27x32xbf16, #tpu.memory_space<vmem>>, vector<27x32xbf16>
    %cst = arith.constant dense<0.000000e+00> : vector<256x32xf32>
    %2 = tpu.matmul %0, %1, %cst {dimension_numbers = #tpu.dot_dimension_numbers<[1], [0], [0], [1], [0, 0, 1, 1], [], []>} : vector<256x27xbf16>, vector<27x32xbf16>, vector<256x32xf32> -> vector<256x32xf32>
    %c0_3 = arith.constant 0 : index
    %c0_4 = arith.constant 0 : index
    %3 = vector.load %arg3[%c0_3, %c0_4] : memref<1x32xf32, #tpu.memory_space<vmem>>, vector<1x32xf32>
    %4 = vector.broadcast %3 : vector<1x32xf32> to vector<256x32xf32>
    %5 = arith.addf %2, %4 : vector<256x32xf32>
    %cst_5 = arith.constant 0.000000e+00 : f32
    %cst_6 = arith.constant 6.000000e+00 : f32
    %6 = vector.broadcast %cst_5 : f32 to vector<256x32xf32>
    %7 = arith.maximumf %6, %5 : vector<256x32xf32>
    %8 = vector.broadcast %cst_6 : f32 to vector<256x32xf32>
    %9 = arith.minimumf %8, %7 : vector<256x32xf32>
    %10 = arith.truncf %9 : vector<256x32xf32> to vector<256x32xbf16>
    %c0_7 = arith.constant 0 : index
    %c0_8 = arith.constant 0 : index
    %11 = vector.load %arg4[%c0_7, %c0_8] : memref<256x32xbf16, #tpu.memory_space<vmem>>, vector<256x32xbf16>
    tpu.vector_store %arg4[%c0_7, %c0_8], %10 {strides = array<i32>} : memref<256x32xbf16, #tpu.memory_space<vmem>>, vector<256x32xbf16>,
    return
  }
  func.func @transform_0(%arg0: i32) -> (i32, i32) {
    %c0_i32 = arith.constant 0 : i32
    %c0_i32_0 = arith.constant 0 : i32
    return %arg0, %c0_i32 : i32, i32
  }
  func.func @transform_1(%arg0: i32) -> (i32, i32) {
    %c0_i32 = arith.constant 0 : i32
    %c0_i32_0 = arith.constant 0 : i32
    %c0_i32_1 = arith.constant 0 : i32
    return %c0_i32, %c0_i32_0 : i32, i32
  }
  func.func @transform_2(%arg0: i32) -> (i32, i32) {
    %c0_i32 = arith.constant 0 : i32
    %c0_i32_0 = arith.constant 0 : i32
    %c0_i32_1 = arith.constant 0 : i32
    return %c0_i32, %c0_i32_0 : i32, i32
  }
  func.func @transform_3(%arg0: i32) -> (i32, i32) {
    %c0_i32 = arith.constant 0 : i32
    %c0_i32_0 = arith.constant 0 : i32
    return %arg0, %c0_i32 : i32, i32
  }
}

</mosaic_0001>

<bundles_post_ra>
// kernel: tpu_custom_call.1
= control target key start
LH: loop header
LB: loop body
LE: loop exit
PB: predicated region body
PF: predicated region fallthrough
CT: control target
= control target key end

     0   :  { %s798_s12 = smov 0   ;;  %s968_s0 = inlined_call_operand.vmem [shape: bf16[512,27], index: 0, kind: input, shape index: {}]   ;;  %s969_s1 = inlined_call_operand.vmem [shape: bf16[27,32], index: 1, kind: input, shape index: {}]   ;;  %s970_s2 = inlined_call_operand.vmem [shape: f32[1,32], index: 2, kind: input, shape index: {}]   ;;  %s971_s3 = inlined_call_operand.vmem [shape: bf16[512,32], index: 3, kind: output, shape index: {}]  }
   0x1 LB: > { %s636_s13 = sadd.s32 4294967295, %s775_s12   ;;  %p640_p0 = scmp.ge.s32.totalorder %s775_s12, 1  ;;  %s775_s12 = sphi %s798_s12, %s13_s12  }
   0x2   : > { %p138_p1 = scmp.lt.s32.totalorder %s775_s12, 3 }
   0x4   : > { %p139_p2 = pnand %p640_p0, %p138_p1 }
   0x5   : > { %s641_s18 = sshll.u32 (!%p139_p2), %s636_s13, 5 }
   0x6   : > { %142 = sbr.rel (%p139_p2) target bundleno = 223 (0xdf), region = 32  ;;  %p163_p3 = scmp.lt.s32.totalorder (!%p139_p2), %s641_s18, 63 }
   0xb   : > { %v715_v0 = vld [vmem:[%s969_s1 + $0x8] sm:$0xf]  ;;  %v752_v1 = vld [vmem:[%s969_s1 + $0x8] sm:$0x30]  ;;  %vm355_vm0 = vcmask 1044480   ;;  %vm356_vm1 = vcmask 1045504  }
   0xc   : > { %v716_v2 = vor.u32 %v752_v1, %v715_v0  ;;  %v777_v3 = vmov 65535   ;;  %s973_s18 = smov (!%p163_p3, %s641_s18), 63  ;;  %v751_v7 = vld [vmem:[%s969_s1] sm:$0xff]  ;;  %vm306_vm2 = vcmask 220160   ;;  %vm547_vm3 = vcmask 257024  }
   0xd   : > { %v357_v4 = vsel %vm355_vm0, 4294967295, %v777_v3  ;;  %s642_s21 = sshll.u32 %s973_s18, 2  ;;  %v860_v24 = vld [vmem:[%s970_s2] ss:$0 sm:$0xff] }
   0xe   : > { %v358_v5 = vsel %vm356_vm1, %v357_v4, 0  ;;  %s823_s24 = scalar_lea.vmem %s968_s0, %s642_s21  ;;  %s869_s29 = scalar_lea.vmem %s971_s3, %s642_s21 }
   0xf   : > { %v360_v6 = vand.u32 %v716_v2, %v358_v5  ;;  %v735_v8 = vld [vmem:[%s823_s24] sm:$0xff]  ;;  %v736_v12 = vld [vmem:[%s823_s24 + $0x8] sm:$0xff]  ;;  %v737_v16 = vld [vmem:[%s823_s24 + $0x10] sm:$0xff] }
  0x10   : > { %v739_v9 = vld [vmem:[%s823_s24 + $0x20] sm:$0xff]  ;;  %v740_v13 = vld [vmem:[%s823_s24 + $0x28] sm:$0xff]  ;;  %v741_v17 = vld [vmem:[%s823_s24 + $0x30] sm:$0xff] }
  0x11   : > { %368 = vmatpush.bf16.msra.mxu0 %v360_v6  ;;  %753 = vmatpush.bf16.msra.mxu1 %v360_v6  ;;  %v743_v10 = vld [vmem:[%s823_s24 + $0x40] sm:$0xff]  ;;  %v744_v14 = vld [vmem:[%s823_s24 + $0x48] sm:$0xff]  ;;  %v745_v18 = vld [vmem:[%s823_s24 + $0x50] sm:$0xff] }
  0x12   : > { %754 = vmatpush.bf16.msra.mxu2 %v360_v6  ;;  %755 = vmatpush.bf16.msra.mxu3 %v360_v6  ;;  %v747_v11 = vld [vmem:[%s823_s24 + $0x60] sm:$0xff]  ;;  %v748_v15 = vld [vmem:[%s823_s24 + $0x68] sm:$0xff]  ;;  %v749_v19 = vld [vmem:[%s823_s24 + $0x70] sm:$0xff] }
  0x13   : > { %v738_v20 = vld [vmem:[%s823_s24 + $0x18] sm:$0xff] }
  0x14   : > { %v742_v21 = vld [vmem:[%s823_s24 + $0x38] sm:$0xff] }
  0x15   : > { %369 = vmatpush.bf16.msra.mxu0 %v751_v7  ;;  %756 = vmatpush.bf16.msra.mxu1 %v751_v7  ;;  %v746_v22 = vld [vmem:[%s823_s24 + $0x58] sm:$0xff] }
  0x16   : > { %757 = vmatpush.bf16.msra.mxu2 %v751_v7  ;;  %758 = vmatpush.bf16.msra.mxu3 %v751_v7  ;;  %v750_v23 = vld [vmem:[%s823_s24 + $0x78] sm:$0xff] }
  0x18   : > { %717 = vmatmul.msk.bf16.vlgmr.msra.gmra.mxu0 %vm306_vm2, %v735_v8  ;;  %721 = vmatmul.msk.bf16.vlgmr.msra.gmra.mxu1 %vm306_vm2, %v739_v9 }
  0x19   : > { %725 = vmatmul.msk.bf16.vlgmr.msra.gmra.mxu2 %vm306_vm2, %v743_v10  ;;  %729 = vmatmul.msk.bf16.vlgmr.msra.gmra.mxu3 %vm306_vm2, %v747_v11 }
  0x28   : > { %718 = vmatmul.msk.bf16.gmra.mxu0 %vm306_vm2, %v736_v12  ;;  %722 = vmatmul.msk.bf16.gmra.mxu1 %vm306_vm2, %v740_v13 }
  0x29   : > { %726 = vmatmul.msk.bf16.gmra.mxu2 %vm306_vm2, %v744_v14  ;;  %730 = vmatmul.msk.bf16.gmra.mxu3 %vm306_vm2, %v748_v15 }
  0x38   : > { %719 = vmatmul.msk.bf16.gmra.mxu0 %vm306_vm2, %v737_v16  ;;  %723 = vmatmul.msk.bf16.gmra.mxu1 %vm306_vm2, %v741_v17 }
  0x39   : > { %727 = vmatmul.msk.bf16.gmra.mxu2 %vm306_vm2, %v745_v18  ;;  %731 = vmatmul.msk.bf16.gmra.mxu3 %vm306_vm2, %v749_v19 }
  0x48   : > { %720 = vmatmul.msk.bf16.gmra.mxu0 %vm306_vm2, %v738_v20  ;;  %724 = vmatmul.msk.bf16.gmra.mxu1 %vm306_vm2, %v742_v21 }
  0x49   : > { %728 = vmatmul.msk.bf16.gmra.mxu2 %vm306_vm2, %v746_v22  ;;  %732 = vmatmul.msk.bf16.gmra.mxu3 %vm306_vm2, %v750_v23 }
  0x95   : > { %v371_v25 = vpop.f32.mrf.mxu0  ;;  %v391_v26 = vpop.f32.mrf.mxu1 }
  0x96   : > { %v372_v27 = vadd.f32 %v860_v24, %v371_v25  ;;  %v392_v28 = vadd.f32 %v860_v24, %v391_v26 }
  0x98   : > { %v451_v29 = vmax.f32 %v372_v27, 0.0  ;;  %v459_v30 = vmax.f32 %v392_v28, 0.0 }
  0x9a   : > { %v483_v31 = vmin.f32 %v451_v29, 6.0  ;;  %v491_v32 = vmin.f32 %v459_v30, 6.0 }
  0x9c   : > { %v515_v33 = vpack.c.bf16 %v483_v31, %v483_v31  ;;  %v523_v34 = vpack.c.bf16 %v491_v32, %v491_v32  ;;  %v411_v35 = vpop.f32.mrf.mxu2  ;;  %v431_v36 = vpop.f32.mrf.mxu3 }
  0x9d   : > { %v412_v37 = vadd.f32 %v860_v24, %v411_v35  ;;  %v432_v38 = vadd.f32 %v860_v24, %v431_v36  ;;  %v373_v39 = vpop.f32.mrf.mxu0  ;;  %v393_v40 = vpop.f32.mrf.mxu1 }
  0x9e   : > { %548 = vst.msk [vmem:[%s869_s29] sm:$0xf] %vm547_vm3, %v515_v33  ;;  %v374_v41 = vadd.f32 %v860_v24, %v373_v39  ;;  %v394_v42 = vadd.f32 %v860_v24, %v393_v40 }
  0x9f   : > { %556 = vst.msk [vmem:[%s869_s29 + $0x20] sm:$0xf] %vm547_vm3, %v523_v34  ;;  %v467_v43 = vmax.f32 %v412_v37, 0.0  ;;  %v475_v44 = vmax.f32 %v432_v38, 0.0 }
  0xa0   : > { %v452_v45 = vmax.f32 %v374_v41, 0.0  ;;  %v460_v46 = vmax.f32 %v394_v42, 0.0 }
  0xa1   : > { %v499_v47 = vmin.f32 %v467_v43, 6.0  ;;  %v507_v48 = vmin.f32 %v475_v44, 6.0 }
  0xa2   : > { %v484_v49 = vmin.f32 %v452_v45, 6.0  ;;  %v492_v50 = vmin.f32 %v460_v46, 6.0 }
  0xa3   : > { %v531_v51 = vpack.c.bf16 %v499_v47, %v499_v47  ;;  %v539_v52 = vpack.c.bf16 %v507_v48, %v507_v48 }
  0xa4   : > { %v516_v53 = vpack.c.bf16 %v484_v49, %v484_v49  ;;  %v524_v54 = vpack.c.bf16 %v492_v50, %v492_v50  ;;  %v413_v55 = vpop.f32.mrf.mxu2  ;;  %v433_v56 = vpop.f32.mrf.mxu3 }
  0xa5   : > { %564 = vst.msk [vmem:[%s869_s29 + $0x40] sm:$0xf] %vm547_vm3, %v531_v51  ;;  %v414_v57 = vadd.f32 %v860_v24, %v413_v55  ;;  %v434_v58 = vadd.f32 %v860_v24, %v433_v56  ;;  %v376_v59 = vpop.f32.mrf.mxu0  ;;  %v396_v60 = vpop.f32.mrf.mxu1 }
  0xa6   : > { %572 = vst.msk [vmem:[%s869_s29 + $0x60] sm:$0xf] %vm547_vm3, %v539_v52  ;;  %v377_v61 = vadd.f32 %v860_v24, %v376_v59  ;;  %v397_v62 = vadd.f32 %v860_v24, %v396_v60 }
  0xa7   : > { %549 = vst.msk [vmem:[%s869_s29 + $0x4] sm:$0xf] %vm547_vm3, %v516_v53  ;;  %v468_v63 = vmax.f32 %v414_v57, 0.0  ;;  %v476_v0 = vmax.f32 %v434_v58, 0.0 }
  0xa8   : > { %557 = vst.msk [vmem:[%s869_s29 + $0x24] sm:$0xf] %vm547_vm3, %v524_v54  ;;  %v453_v1 = vmax.f32 %v377_v61, 0.0  ;;  %v461_v2 = vmax.f32 %v397_v62, 0.0 }
  0xa9   : > { %v500_v3 = vmin.f32 %v468_v63, 6.0  ;;  %v508_v4 = vmin.f32 %v476_v0, 6.0 }
  0xaa   : > { %v485_v5 = vmin.f32 %v453_v1, 6.0  ;;  %v493_v6 = vmin.f32 %v461_v2, 6.0 }
  0xab   : > { %v532_v7 = vpack.c.bf16 %v500_v3, %v500_v3  ;;  %v540_v8 = vpack.c.bf16 %v508_v4, %v508_v4 }
  0xac   : > { %v517_v9 = vpack.c.bf16 %v485_v5, %v485_v5  ;;  %v525_v10 = vpack.c.bf16 %v493_v6, %v493_v6  ;;  %v416_v11 = vpop.f32.mrf.mxu2  ;;  %v436_v12 = vpop.f32.mrf.mxu3 }
  0xad   : > { %565 = vst.msk [vmem:[%s869_s29 + $0x44] sm:$0xf] %vm547_vm3, %v532_v7  ;;  %v417_v13 = vadd.f32 %v860_v24, %v416_v11  ;;  %v437_v14 = vadd.f32 %v860_v24, %v436_v12  ;;  %v378_v15 = vpop.f32.mrf.mxu0  ;;  %v398_v16 = vpop.f32.mrf.mxu1 }
  0xae   : > { %573 = vst.msk [vmem:[%s869_s29 + $0x64] sm:$0xf] %vm547_vm3, %v540_v8  ;;  %v379_v17 = vadd.f32 %v860_v24, %v378_v15  ;;  %v399_v18 = vadd.f32 %v860_v24, %v398_v16 }
  0xaf   : > { %550 = vst.msk [vmem:[%s869_s29 + $0x8] sm:$0xf] %vm547_vm3, %v517_v9  ;;  %v469_v19 = vmax.f32 %v417_v13, 0.0  ;;  %v477_v20 = vmax.f32 %v437_v14, 0.0 }
  0xb0   : > { %558 = vst.msk [vmem:[%s869_s29 + $0x28] sm:$0xf] %vm547_vm3, %v525_v10  ;;  %v454_v21 = vmax.f32 %v379_v17, 0.0  ;;  %v462_v22 = vmax.f32 %v399_v18, 0.0 }
  0xb1   : > { %v501_v23 = vmin.f32 %v469_v19, 6.0  ;;  %v509_v25 = vmin.f32 %v477_v20, 6.0 }
  0xb2   : > { %v486_v26 = vmin.f32 %v454_v21, 6.0  ;;  %v494_v27 = vmin.f32 %v462_v22, 6.0 }
  0xb3   : > { %v533_v28 = vpack.c.bf16 %v501_v23, %v501_v23  ;;  %v541_v29 = vpack.c.bf16 %v509_v25, %v509_v25 }
  0xb4   : > { %v518_v30 = vpack.c.bf16 %v486_v26, %v486_v26  ;;  %v526_v31 = vpack.c.bf16 %v494_v27, %v494_v27  ;;  %v418_v32 = vpop.f32.mrf.mxu2  ;;  %v438_v33 = vpop.f32.mrf.mxu3 }
  0xb5   : > { %566 = vst.msk [vmem:[%s869_s29 + $0x48] sm:$0xf] %vm547_vm3, %v533_v28  ;;  %v419_v34 = vadd.f32 %v860_v24, %v418_v32  ;;  %v439_v35 = vadd.f32 %v860_v24, %v438_v33  ;;  %v381_v36 = vpop.f32.mrf.mxu0  ;;  %v401_v37 = vpop.f32.mrf.mxu1 }
  0xb6   : > { %574 = vst.msk [vmem:[%s869_s29 + $0x68] sm:$0xf] %vm547_vm3, %v541_v29  ;;  %v382_v38 = vadd.f32 %v860_v24, %v381_v36  ;;  %v402_v39 = vadd.f32 %v860_v24, %v401_v37 }
  0xb7   : > { %551 = vst.msk [vmem:[%s869_s29 + $0xc] sm:$0xf] %vm547_vm3, %v518_v30  ;;  %v470_v40 = vmax.f32 %v419_v34, 0.0  ;;  %v478_v41 = vmax.f32 %v439_v35, 0.0 }
  0xb8   : > { %559 = vst.msk [vmem:[%s869_s29 + $0x2c] sm:$0xf] %vm547_vm3, %v526_v31  ;;  %v455_v42 = vmax.f32 %v382_v38, 0.0  ;;  %v463_v43 = vmax.f32 %v402_v39, 0.0 }
  0xb9   : > { %v502_v44 = vmin.f32 %v470_v40, 6.0  ;;  %v510_v45 = vmin.f32 %v478_v41, 6.0 }
  0xba   : > { %v487_v46 = vmin.f32 %v455_v42, 6.0  ;;  %v495_v47 = vmin.f32 %v463_v43, 6.0 }
  0xbb   : > { %v534_v48 = vpack.c.bf16 %v502_v44, %v502_v44  ;;  %v542_v49 = vpack.c.bf16 %v510_v45, %v510_v45 }
  0xbc   : > { %v519_v50 = vpack.c.bf16 %v487_v46, %v487_v46  ;;  %v527_v51 = vpack.c.bf16 %v495_v47, %v495_v47  ;;  %v421_v52 = vpop.f32.mrf.mxu2  ;;  %v441_v53 = vpop.f32.mrf.mxu3 }
  0xbd   : > { %567 = vst.msk [vmem:[%s869_s29 + $0x4c] sm:$0xf] %vm547_vm3, %v534_v48  ;;  %v422_v54 = vadd.f32 %v860_v24, %v421_v52  ;;  %v442_v55 = vadd.f32 %v860_v24, %v441_v53  ;;  %v383_v56 = vpop.f32.mrf.mxu0  ;;  %v403_v57 = vpop.f32.mrf.mxu1 }
  0xbe   : > { %575 = vst.msk [vmem:[%s869_s29 + $0x6c] sm:$0xf] %vm547_vm3, %v542_v49  ;;  %v384_v58 = vadd.f32 %v860_v24, %v383_v56  ;;  %v404_v59 = vadd.f32 %v860_v24, %v403_v57 }
  0xbf   : > { %552 = vst.msk [vmem:[%s869_s29 + $0x10] sm:$0xf] %vm547_vm3, %v519_v50  ;;  %v471_v60 = vmax.f32 %v422_v54, 0.0  ;;  %v479_v61 = vmax.f32 %v442_v55, 0.0 }
  0xc0   : > { %560 = vst.msk [vmem:[%s869_s29 + $0x30] sm:$0xf] %vm547_vm3, %v527_v51  ;;  %v456_v62 = vmax.f32 %v384_v58, 0.0  ;;  %v464_v63 = vmax.f32 %v404_v59, 0.0 }
  0xc1   : > { %v503_v0 = vmin.f32 %v471_v60, 6.0  ;;  %v511_v1 = vmin.f32 %v479_v61, 6.0 }
  0xc2   : > { %v488_v2 = vmin.f32 %v456_v62, 6.0  ;;  %v496_v3 = vmin.f32 %v464_v63, 6.0 }
  0xc3   : > { %v535_v4 = vpack.c.bf16 %v503_v0, %v503_v0  ;;  %v543_v5 = vpack.c.bf16 %v511_v1, %v511_v1 }
  0xc4   : > { %v520_v6 = vpack.c.bf16 %v488_v2, %v488_v2  ;;  %v528_v7 = vpack.c.bf16 %v496_v3, %v496_v3  ;;  %v423_v8 = vpop.f32.mrf.mxu2  ;;  %v443_v9 = vpop.f32.mrf.mxu3 }
  0xc5   : > { %568 = vst.msk [vmem:[%s869_s29 + $0x50] sm:$0xf] %vm547_vm3, %v535_v4  ;;  %v424_v10 = vadd.f32 %v860_v24, %v423_v8  ;;  %v444_v11 = vadd.f32 %v860_v24, %v443_v9  ;;  %v386_v12 = vpop.f32.mrf.mxu0  ;;  %v406_v13 = vpop.f32.mrf.mxu1 }
  0xc6   : > { %576 = vst.msk [vmem:[%s869_s29 + $0x70] sm:$0xf] %vm547_vm3, %v543_v5  ;;  %v387_v14 = vadd.f32 %v860_v24, %v386_v12  ;;  %v407_v15 = vadd.f32 %v860_v24, %v406_v13 }
  0xc7   : > { %553 = vst.msk [vmem:[%s869_s29 + $0x14] sm:$0xf] %vm547_vm3, %v520_v6  ;;  %v472_v16 = vmax.f32 %v424_v10, 0.0  ;;  %v480_v17 = vmax.f32 %v444_v11, 0.0 }
  0xc8   : > { %561 = vst.msk [vmem:[%s869_s29 + $0x34] sm:$0xf] %vm547_vm3, %v528_v7  ;;  %v457_v18 = vmax.f32 %v387_v14, 0.0  ;;  %v465_v19 = vmax.f32 %v407_v15, 0.0 }
  0xc9   : > { %v504_v20 = vmin.f32 %v472_v16, 6.0  ;;  %v512_v21 = vmin.f32 %v480_v17, 6.0 }
  0xca   : > { %v489_v22 = vmin.f32 %v457_v18, 6.0  ;;  %v497_v23 = vmin.f32 %v465_v19, 6.0 }
  0xcb   : > { %v536_v25 = vpack.c.bf16 %v504_v20, %v504_v20  ;;  %v544_v26 = vpack.c.bf16 %v512_v21, %v512_v21 }
  0xcc   : > { %v521_v27 = vpack.c.bf16 %v489_v22, %v489_v22  ;;  %v529_v28 = vpack.c.bf16 %v497_v23, %v497_v23  ;;  %v426_v29 = vpop.f32.mrf.mxu2  ;;  %v446_v30 = vpop.f32.mrf.mxu3 }
  0xcd   : > { %569 = vst.msk [vmem:[%s869_s29 + $0x54] sm:$0xf] %vm547_vm3, %v536_v25  ;;  %v427_v31 = vadd.f32 %v860_v24, %v426_v29  ;;  %v447_v32 = vadd.f32 %v860_v24, %v446_v30  ;;  %v388_v33 = vpop.f32.mrf.mxu0  ;;  %v408_v34 = vpop.f32.mrf.mxu1 }
  0xce   : > { %577 = vst.msk [vmem:[%s869_s29 + $0x74] sm:$0xf] %vm547_vm3, %v544_v26  ;;  %v389_v35 = vadd.f32 %v860_v24, %v388_v33  ;;  %v409_v36 = vadd.f32 %v860_v24, %v408_v34 }
  0xcf   : > { %554 = vst.msk [vmem:[%s869_s29 + $0x18] sm:$0xf] %vm547_vm3, %v521_v27  ;;  %v473_v37 = vmax.f32 %v427_v31, 0.0  ;;  %v481_v38 = vmax.f32 %v447_v32, 0.0 }
  0xd0   : > { %562 = vst.msk [vmem:[%s869_s29 + $0x38] sm:$0xf] %vm547_vm3, %v529_v28  ;;  %v458_v39 = vmax.f32 %v389_v35, 0.0  ;;  %v466_v40 = vmax.f32 %v409_v36, 0.0 }
  0xd1   : > { %v505_v41 = vmin.f32 %v473_v37, 6.0  ;;  %v513_v42 = vmin.f32 %v481_v38, 6.0 }
  0xd2   : > { %v490_v43 = vmin.f32 %v458_v39, 6.0  ;;  %v498_v44 = vmin.f32 %v466_v40, 6.0 }
  0xd3   : > { %v537_v45 = vpack.c.bf16 %v505_v41, %v505_v41  ;;  %v545_v46 = vpack.c.bf16 %v513_v42, %v513_v42 }
  0xd4   : > { %v522_v47 = vpack.c.bf16 %v490_v43, %v490_v43  ;;  %v530_v48 = vpack.c.bf16 %v498_v44, %v498_v44  ;;  %v428_v49 = vpop.f32.mrf.mxu2  ;;  %v448_v50 = vpop.f32.mrf.mxu3 }
  0xd5   : > { %570 = vst.msk [vmem:[%s869_s29 + $0x58] sm:$0xf] %vm547_vm3, %v537_v45  ;;  %v429_v51 = vadd.f32 %v860_v24, %v428_v49  ;;  %v449_v52 = vadd.f32 %v860_v24, %v448_v50 }
  0xd6   : > { %578 = vst.msk [vmem:[%s869_s29 + $0x78] sm:$0xf] %vm547_vm3, %v545_v46 }
  0xd7   : > { %555 = vst.msk [vmem:[%s869_s29 + $0x1c] sm:$0xf] %vm547_vm3, %v522_v47  ;;  %v474_v53 = vmax.f32 %v429_v51, 0.0  ;;  %v482_v54 = vmax.f32 %v449_v52, 0.0 }
  0xd8   : > { %563 = vst.msk [vmem:[%s869_s29 + $0x3c] sm:$0xf] %vm547_vm3, %v530_v48 }
  0xd9   : > { %v506_v55 = vmin.f32 %v474_v53, 6.0  ;;  %v514_v56 = vmin.f32 %v482_v54, 6.0 }
  0xdb   : > { %v538_v57 = vpack.c.bf16 %v506_v55, %v506_v55  ;;  %v546_v58 = vpack.c.bf16 %v514_v56, %v514_v56 }
  0xdd   : > { %571 = vst.msk [vmem:[%s869_s29 + $0x5c] sm:$0xf] %vm547_vm3, %v538_v57 }
  0xde   : > { %579 = vst.msk [vmem:[%s869_s29 + $0x7c] sm:$0xf] %vm547_vm3, %v546_v58 }
  0xdf PF: > { %s13_s12 = sadd.s32 1, %s775_s12  }
  0xe0   : > { %p10_p4 = scmp.ge.s32.totalorder %s13_s12, 4  }
  0xe2   :  { %12 = sbr.rel (!%p10_p4) target bundleno = 1 (0x1), region = 62 }

</bundles_post_ra>
